<compile_context>
chip_gen: v6e
topology: v6e:2x2x1
jax: 0.10.0
libtpu: 0.0.40
codegen_flags: <defaults>
</compile_context>

<pallas_src>
import math

import jax
import jax.numpy as jnp
from jax import lax
from jax.experimental import pallas as pl
from jax.experimental.pallas import tpu as pltpu


# ----------------------------------------------------------------------------
# Mixture forward kernel (per-sample mixture log-likelihood)
#
#   z[k, n] = sum_d A[k, d'] * feat[n, d']          (one fused MXU dot)
#             + bias[k]
#   with A    = [-0.5*inv_var | mu*inv_var]   (K, 2D)  -- precomputed
#        feat = [x*x | x]                     (tile_n, 2D) -- built in-kernel
#        bias = log_w - 0.5*mu'Σ⁻¹mu + log_norm
#   out[n]  = logsumexp_k z[k, n]
#
# K sits on the sublane axis, samples on the lane axis -> lane-dense output.
# ----------------------------------------------------------------------------
def _mixture_loglik_kernel(a_ref, bias_ref, x_ref, out_ref):
    x = x_ref[...]                                        # (tile_n, D)  f32
    feat = jnp.concatenate([x * x, x], axis=1)            # (tile_n, 2D)

    z = lax.dot_general(
        a_ref[...], feat,                                 # (K,2D) x (tile_n,2D)
        dimension_numbers=(((1,), (1,)), ((), ())),
        preferred_element_type=jnp.float32,
    ) + bias_ref[...]                                     # (K, tile_n)

    # logsumexp over the component (sublane) axis -> lane-dense (1, tile_n)
    zmax = jnp.max(z, axis=0, keepdims=True)
    out_ref[...] = zmax + jnp.log(
        jnp.sum(jnp.exp(z - zmax), axis=0, keepdims=True))


def _round_up(a: int, m: int) -> int:
    return ((a + m - 1) // m) * m


def _pick_tile(n: int, tile_n: int) -> int:
    """Lane-dense tile: multiple of 128, >=2 grid steps when enough data."""
    tile = max(128, (int(tile_n) // 128) * 128)
    n_ceil = _round_up(max(int(n), 1), 128)
    if n_ceil >= 2 * 128:
        # keep at least 2 grid steps so both v7x TensorCores get work
        tile = min(tile, _round_up((n_ceil + 1) // 2, 128))
    return min(tile, n_ceil)


def mixture_log_prob_pallas(x, mus, logvars, logits, *, tile_n=4096):
    """Per-sample mixture log-likelihood, shape (N,), float32."""
    N, D = x.shape
    K = mus.shape[0]

    x = x.astype(jnp.float32)
    mus = mus.astype(jnp.float32)
    logvars = logvars.astype(jnp.float32)
    logits = logits.astype(jnp.float32)

    # --- one-time parameter-only precompute (hoisted out of the hot kernel) ---
    inv_var = jnp.exp(-logvars)                                   # (K, D)
    a1 = -0.5 * inv_var                                           # (K, D)
    a2 = mus * inv_var                                            # (K, D)
    amat = jnp.concatenate([a1, a2], axis=1)                      # (K, 2D)
    log_w = jax.nn.log_softmax(logits)                            # (K,)
    log_norm = -0.5 * (jnp.sum(logvars, axis=-1)
                       + D * math.log(2.0 * math.pi))             # (K,)
    mu_term = jnp.sum(mus * mus * inv_var, axis=-1)               # (K,)
    bias = (log_w + log_norm - 0.5 * mu_term).reshape(K, 1)       # (K, 1)

    # --- tiling: native (N, D) layout, no pad, cdiv grid with masked tail ---
    tile = _pick_tile(N, tile_n)
    grid = (pl.cdiv(N, tile),)

    out = pl.pallas_call(
        _mixture_loglik_kernel,
        out_shape=jax.ShapeDtypeStruct((1, N), jnp.float32),
        grid_spec=pltpu.PrefetchScalarGridSpec(
            num_scalar_prefetch=0,
            grid=grid,
            in_specs=[
                pl.BlockSpec((K, 2 * D), lambda i: (0, 0)),       # A (resident)
                pl.BlockSpec((K, 1), lambda i: (0, 0)),           # bias (resident)
                pl.BlockSpec((tile, D), lambda i: (i, 0)),        # x tile (native)
            ],
            out_specs=pl.BlockSpec((1, tile), lambda i: (0, i)),  # lane-dense out
        ),
        compiler_params=pltpu.CompilerParams(
            dimension_semantics=("parallel",)),
    )(amat, bias, x)
    return out.reshape(N)


# ----------------------------------------------------------------------------
# Thin module-like wrapper mirroring MixtureModel.__init__
# ----------------------------------------------------------------------------
class MixtureModelPallas:
    def __init__(self, num_components: int, num_dims: int,
                 init_radius: float = 1.0, key=None):
        self.num_components = num_components
        self.num_dims = num_dims
        # torch.nn.Parameter(torch.zeros(num_components))
        self.logits = jnp.zeros((num_components,), dtype=jnp.float32)
        # Deterministic component init (what a concrete subclass would own):
        if key is None:
            key = jax.random.PRNGKey(0)
        kmu, _ = jax.random.split(key)
        self.mus = jax.random.uniform(
            kmu, (num_components, num_dims), jnp.float32,
            minval=-init_radius, maxval=init_radius)
        self.logvars = jnp.zeros((num_components, num_dims), jnp.float32)

    def mixture_parameters(self):
        return iter([self.logits])

    def get_probs(self):
        # logits_to_probs == softmax; K~4 -> plain JAX (a pallas_call here is
        # pure dispatch overhead per the perf review).
        return jax.nn.softmax(self.logits)

    def forward(self, x, *, tile_n=4096):
        return mixture_log_prob_pallas(x, self.mus, self.logvars, self.logits,
                                       tile_n=tile_n)


# ----------------------------------------------------------------------------
# Pure-JAX reference for verification
# ----------------------------------------------------------------------------
def _ref_forward(x, mus, logvars, logits):
    var = jnp.exp(logvars)
    diff = x[:, None, :] - mus[None, :, :]                        # (N, K, D)
    maha = jnp.sum(diff * diff / var[None, :, :], axis=-1)        # (N, K)
    log_norm = -0.5 * (jnp.sum(logvars, axis=-1)
                       + x.shape[-1] * math.log(2.0 * math.pi))   # (K,)
    comp_ll = -0.5 * maha + log_norm[None, :]                     # (N, K)
    log_w = jax.nn.log_softmax(logits)                            # (K,)
    return jax.nn.logsumexp(comp_ll + log_w[None, :], axis=-1)    # (N,)


if __name__ == "__main__":
    key = jax.random.PRNGKey(0)
    k_x, k_model, k_x2 = jax.random.split(key, 3)

    num_components = 4
    num_dims = 8
    N = 16

    model = MixtureModelPallas(num_components, num_dims, init_radius=1.0,
                               key=k_model)
    x = jax.random.normal(k_x, (N, num_dims), dtype=jnp.float32)

    probs = jax.block_until_ready(model.get_probs())
    logp = jax.block_until_ready(model.forward(x))

    # correctness checks against plain-JAX reference
    probs_ref = jax.nn.softmax(model.logits)
    logp_ref = _ref_forward(x, model.mus, model.logvars, model.logits)
    assert probs.shape == (num_components,)
    assert logp.shape == (N,)
    assert jnp.allclose(probs, probs_ref, atol=1e-5, rtol=1e-5)
    assert jnp.allclose(logp, logp_ref, atol=1e-4, rtol=1e-4)

    # second case: ragged N (not a multiple of the tile) + multi-step grid
    N2 = 300
    x2 = jax.random.normal(k_x2, (N2, num_dims), dtype=jnp.float32)
    logp2 = jax.block_until_ready(
        mixture_log_prob_pallas(x2, model.mus, model.logvars, model.logits,
                                tile_n=128))
    logp2_ref = _ref_forward(x2, model.mus, model.logvars, model.logits)
    assert logp2.shape == (N2,)
    assert jnp.allclose(logp2, logp2_ref, atol=1e-4, rtol=1e-4)

    # third case: default (large) tile_n with a ragged N and auto tile capping
    N3 = 700
    x3 = jax.random.normal(k_x, (N3, num_dims), dtype=jnp.float32)
    logp3 = jax.block_until_ready(
        mixture_log_prob_pallas(x3, model.mus, model.logvars, model.logits))
    logp3_ref = _ref_forward(x3, model.mus, model.logvars, model.logits)
    assert logp3.shape == (N3,)
    assert jnp.allclose(logp3, logp3_ref, atol=1e-4, rtol=1e-4)

    print("KERNEL_OK")
</pallas_src>

<mosaic_0001>
module attributes {stable_mosaic.version = 11 : i64} {
  func.func @_mixture_loglik_kernel(%arg0: i32, %arg1: memref<4x16xf32, #tpu.memory_space<vmem>>, %arg2: memref<4x1xf32, #tpu.memory_space<vmem>>, %arg3: memref<128x8xf32, #tpu.memory_space<vmem>>, %arg4: memref<1x128xf32, #tpu.memory_space<vmem>>) attributes {dimension_semantics = [#tpu.dimension_semantics<parallel>], iteration_bounds = array<i64: 1>, scalar_prefetch = 0 : i64, scratch_operands = 0 : i64, tpu.core_type = #tpu.core_type<tc>, window_params = [{pipeline_mode = #tpu.pipeline_mode<synchronous>, transform_indices = @transform_0, window_bounds = array<i64: 4, 16>}, {pipeline_mode = #tpu.pipeline_mode<synchronous>, transform_indices = @transform_1, window_bounds = array<i64: 4, 1>}, {transform_indices = @transform_2, window_bounds = array<i64: 128, 8>}, {transform_indices = @transform_3, window_bounds = array<i64: 1, 128>}]} {
    %c0 = arith.constant 0 : index
    %c0_0 = arith.constant 0 : index
    %0 = vector.load %arg3[%c0, %c0_0] : memref<128x8xf32, #tpu.memory_space<vmem>>, vector<128x8xf32>
    %1 = arith.mulf %0, %0 : vector<128x8xf32>
    %2 = tpu.concatenate %1, %0 in 1 : vector<128x8xf32>, vector<128x8xf32> -> vector<128x16xf32>
    %c0_1 = arith.constant 0 : index
    %c0_2 = arith.constant 0 : index
    %3 = vector.load %arg1[%c0_1, %c0_2] : memref<4x16xf32, #tpu.memory_space<vmem>>, vector<4x16xf32>
    %cst = arith.constant dense<0.000000e+00> : vector<4x128xf32>
    %4 = tpu.matmul %3, %2, %cst {dimension_numbers = #tpu.dot_dimension_numbers<[1], [1], [0], [0], [0, 0, 1, 0], [], []>} : vector<4x16xf32>, vector<128x16xf32>, vector<4x128xf32> -> vector<4x128xf32>
    %c0_3 = arith.constant 0 : index
    %c0_4 = arith.constant 0 : index
    %5 = vector.load %arg2[%c0_3, %c0_4] : memref<4x1xf32, #tpu.memory_space<vmem>>, vector<4x1xf32>
    %6 = vector.broadcast %5 : vector<4x1xf32> to vector<4x128xf32>
    %7 = arith.addf %4, %6 : vector<4x128xf32>
    %cst_5 = arith.constant dense<0xFF800000> : vector<128xf32>
    %8 = vector.multi_reduction <maximumf>, %7, %cst_5 [0] : vector<4x128xf32> to vector<128xf32>
    %9 = vector.shape_cast %8 : vector<128xf32> to vector<1x128xf32>
    %10 = vector.broadcast %9 : vector<1x128xf32> to vector<4x128xf32>
    %11 = arith.subf %7, %10 : vector<4x128xf32>
    %12 = math.exp %11 : vector<4x128xf32>
    %cst_6 = arith.constant dense<0.000000e+00> : vector<128xf32>
    %13 = vector.multi_reduction <add>, %12, %cst_6 [0] : vector<4x128xf32> to vector<128xf32>
    %14 = vector.shape_cast %13 : vector<128xf32> to vector<1x128xf32>
    %15 = math.log %14 : vector<1x128xf32>
    %16 = arith.addf %9, %15 : vector<1x128xf32>
    %c0_7 = arith.constant 0 : index
    %c0_8 = arith.constant 0 : index
    %17 = vector.load %arg4[%c0_7, %c0_8] : memref<1x128xf32, #tpu.memory_space<vmem>>, vector<1x128xf32>
    tpu.vector_store %arg4[%c0_7, %c0_8], %16 {strides = array<i32>} : memref<1x128xf32, #tpu.memory_space<vmem>>, vector<1x128xf32>,
    return
  }
  func.func @transform_0(%arg0: i32) -> (i32, i32) {
    %c0_i32 = arith.constant 0 : i32
    %c0_i32_0 = arith.constant 0 : i32
    %c0_i32_1 = arith.constant 0 : i32
    return %c0_i32, %c0_i32_0 : i32, i32
  }
  func.func @transform_1(%arg0: i32) -> (i32, i32) {
    %c0_i32 = arith.constant 0 : i32
    %c0_i32_0 = arith.constant 0 : i32
    %c0_i32_1 = arith.constant 0 : i32
    return %c0_i32, %c0_i32_0 : i32, i32
  }
  func.func @transform_2(%arg0: i32) -> (i32, i32) {
    %c0_i32 = arith.constant 0 : i32
    %c0_i32_0 = arith.constant 0 : i32
    return %arg0, %c0_i32 : i32, i32
  }
  func.func @transform_3(%arg0: i32) -> (i32, i32) {
    %c0_i32 = arith.constant 0 : i32
    %c0_i32_0 = arith.constant 0 : i32
    return %c0_i32, %arg0 : i32, i32
  }
}

</mosaic_0001>

<bundles_post_ra>
// kernel: tpu_custom_call.1
= control target key start
LH: loop header
LB: loop body
LE: loop exit
PB: predicated region body
PF: predicated region fallthrough
CT: control target
= control target key end

     0   :  { %s394_s16 = smov 8   ;;  %v395_v4 = vmov 0.0   ;;  %s577_s0 = inlined_call_operand.vmem [shape: f32[4,16], index: 0, kind: input, shape index: {}]   ;;  %s578_s1 = inlined_call_operand.vmem [shape: f32[4,1], index: 1, kind: input, shape index: {}]   ;;  %s579_s2 = inlined_call_operand.vmem [shape: f32[16,8], index: 2, kind: input, shape index: {}]   ;;  %s580_s3 = inlined_call_operand.hbm [shape: f32[1,16], index: 3, kind: output, shape index: {}]  }
   0x1   :  { %v30_v0 = vld [vmem:[%s579_s2 + $0x78] sm:$0xff]  ;;  %v28_v1 = vld [vmem:[%s579_s2 + $0x68] sm:$0xff]  ;;  %v29_v2 = vld [vmem:[%s579_s2 + $0x70] sm:$0xff]  ;;  %327 = vmatprep.subr.mxu0 %v395_v4 }
   0x2   :  { %93 = vrot.lane.b32.xlu0 %v30_v0, %s394_s16  ;;  %89 = vrot.lane.b32.xlu1 %v28_v1, %s394_s16  ;;  %v27_v3 = vld [vmem:[%s579_s2 + $0x60] sm:$0xff]  ;;  %v26_v5 = vld [vmem:[%s579_s2 + $0x58] sm:$0xff] }
   0x3   :  { %v25_v6 = vld [vmem:[%s579_s2 + $0x50] sm:$0xff] }
   0x6   :  { %91 = vrot.lane.b32.xlu0 %v29_v2, %s394_s16  ;;  %87 = vrot.lane.b32.xlu1 %v27_v3, %s394_s16 }
   0x7   :  { %8 = vsyncpa [#allocation3], 0  ;;  %v24_v7 = vld [vmem:[%s579_s2 + $0x48] sm:$0xff]  ;;  %v23_v8 = vld [vmem:[%s579_s2 + $0x40] sm:$0xff]  ;;  %vm396_vm0 = vmmov 0   ;;  %v397_v18 = vmov 0   ;;  %v46_v19 = vmul.f32 %v30_v0, %v30_v0  ;;  %v45_v21 = vmul.f32 %v29_v2, %v29_v2 }
   0x8   :  { %v22_v9 = vld [vmem:[%s579_s2 + $0x38] sm:$0xff]  ;;  %v458_v10 = vld [vmem:[%s579_s2 + $0x30] sm:$0xff]  ;;  %v466_v11 = vld [vmem:[%s579_s2 + $0x28] sm:$0xff]  ;;  %359 = vmatprep.mubr.msk.f32.mxu0 %vm396_vm0, %v395_v4  ;;  %367 = vset.pattern.permute.xlu0 %v397_v18  ;;  %vm111_vm1 = vcmask 64512   ;;  %vm135_vm2 = vcmask 130048   ;;  %v44_v24 = vmul.f32 %v28_v1, %v28_v1  ;;  %v43_v27 = vmul.f32 %v27_v3, %v27_v3 }
   0x9   :  { %v471_v12 = vld [vmem:[%s579_s2 + $0x20] sm:$0xff]  ;;  %v480_v13 = vld [vmem:[%s579_s2 + $0x18] sm:$0xff]  ;;  %v485_v14 = vld [vmem:[%s579_s2 + $0x10] sm:$0xff]  ;;  %v42_v30 = vmul.f32 %v26_v5, %v26_v5  ;;  %v41_v33 = vmul.f32 %v25_v6, %v25_v6  ;;  %v40_v36 = vmul.f32 %v24_v7, %v24_v7  ;;  %v39_v39 = vmul.f32 %v23_v8, %v23_v8 }
   0xa   :  { %85 = vrot.lane.b32.xlu0 %v26_v5, %s394_s16  ;;  %83 = vrot.lane.b32.xlu1 %v25_v6, %s394_s16  ;;  %v494_v15 = vld [vmem:[%s579_s2 + $0x8] sm:$0xff]  ;;  %v499_v16 = vld [vmem:[%s579_s2] sm:$0xff]  ;;  %v38_v42 = vmul.f32 %v22_v9, %v22_v9  ;;  %v37_v45 = vmul.f32 %v458_v10, %v458_v10  ;;  %v36_v48 = vmul.f32 %v466_v11, %v466_v11  ;;  %vm257_vm3 = vcmask 1043456  }
   0xb   :  { %v129_v17 = vld [vmem:[%s578_s1] sm:$0xf]  ;;  %v35_v51 = vmul.f32 %v471_v12, %v471_v12  ;;  %v34_v54 = vmul.f32 %v480_v13, %v480_v13  ;;  %v33_v57 = vmul.f32 %v485_v14, %v485_v14  ;;  %v32_v60 = vmul.f32 %v494_v15, %v494_v15 }
   0xc   :  { %v31_v63 = vmul.f32 %v499_v16, %v499_v16  ;;  %v128_v3 = vld [vmem:[%s577_s0] sm:$0xf]  ;;  %s398_s0 = smov [#allocation2]  }
   0xe   :  { %81 = vrot.lane.b32.xlu0 %v24_v7, %s394_s16  ;;  %79 = vrot.lane.b32.xlu1 %v23_v8, %s394_s16 }
  0x12   :  { %77 = vrot.lane.b32.xlu0 %v22_v9, %s394_s16  ;;  %75 = vrot.lane.b32.xlu1 %v458_v10, %s394_s16 }
  0x16   :  { %73 = vrot.lane.b32.xlu0 %v466_v11, %s394_s16  ;;  %71 = vrot.lane.b32.xlu1 %v471_v12, %s394_s16 }
  0x1a   :  { %69 = vrot.lane.b32.xlu0 %v480_v13, %s394_s16  ;;  %67 = vrot.lane.b32.xlu1 %v485_v14, %s394_s16 }
  0x1e   :  { %65 = vrot.lane.b32.xlu0 %v494_v15, %s394_s16  ;;  %63 = vrot.lane.b32.xlu1 %v499_v16, %s394_s16  ;;  %s285_s16 = sshll.u32 %s398_s0, 4  ;;  %s286_s16 = int_to_ptr.vmem [resolvable:$true] %s285_s16 }
  0x1f   :  { %s372_s21 = scalar_lea.vmem %s286_s16, 16  ;;  %s376_s22 = scalar_lea.vmem %s286_s16, 32 }
  0x20   :  { %p373_p0 = scmp.ne.s32.totalorder %s286_s16, %s372_s21  ;;  %p377_p1 = scmp.lt.s32.totalorder %s286_s16, %s286_s16 }
  0x21   :  { %p378_p2 = scmp.lt.s32.totalorder %s376_s22, %s372_s21 }
  0x22   :  { %132 = vperm.xlu0 %367, %v129_v17  }
  0x23   :  { %p379_p3 = por %p378_p2, %p377_p1 }
  0x25   :  { %p380_p4 = pnand %p379_p3, %p373_p0 }
  0x74   :  { %v94_v20 = vpop.permute.xlu0 %93  ;;  %v90_v23 = vpop.permute.xlu1 %89 }
  0x75   :  { %v127_v22 = vsel %vm111_vm1, %v46_v19, %v94_v20  ;;  %v125_v28 = vsel %vm111_vm1, %v44_v24, %v90_v23 }
  0x76   :  { %328 = vmatpush3.xpose.msk.msra.mxu0 %vm135_vm2, %v127_v22 }
  0x77   :  { %329 = vmatprep.subr.mxu0 %v395_v4 }
  0x78   :  { %v92_v25 = vpop.permute.xlu0 %91  ;;  %v88_v29 = vpop.permute.xlu1 %87 }
  0x79   :  { %v126_v26 = vsel %vm111_vm1, %v45_v21, %v92_v25  ;;  %v124_v31 = vsel %vm111_vm1, %v43_v27, %v88_v29 }
  0x7a   :  { %330 = vmatpush3.xpose.msk.msra.mxu0 %vm135_vm2, %v126_v26 }
  0x7b   :  { %331 = vmatprep.subr.mxu0 %v395_v4 }
  0x7c   :  { %v86_v32 = vpop.permute.xlu0 %85  ;;  %v84_v35 = vpop.permute.xlu1 %83 }
  0x7d   :  { %v123_v34 = vsel %vm111_vm1, %v42_v30, %v86_v32  ;;  %v122_v37 = vsel %vm111_vm1, %v41_v33, %v84_v35 }
  0x7e   :  { %332 = vmatpush3.xpose.msk.msra.mxu0 %vm135_vm2, %v125_v28 }
  0x7f   :  { %333 = vmatprep.subr.mxu0 %v395_v4 }
  0x80   :  { %v82_v38 = vpop.permute.xlu0 %81  ;;  %v80_v41 = vpop.permute.xlu1 %79 }
  0x81   :  { %v121_v40 = vsel %vm111_vm1, %v40_v36, %v82_v38  ;;  %v120_v43 = vsel %vm111_vm1, %v39_v39, %v80_v41 }
  0x82   :  { %334 = vmatpush3.xpose.msk.msra.mxu0 %vm135_vm2, %v124_v31 }
  0x83   :  { %335 = vmatprep.subr.mxu0 %v395_v4 }
  0x84   :  { %v78_v44 = vpop.permute.xlu0 %77  ;;  %v76_v47 = vpop.permute.xlu1 %75 }
  0x85   :  { %v119_v46 = vsel %vm111_vm1, %v38_v42, %v78_v44  ;;  %v118_v49 = vsel %vm111_vm1, %v37_v45, %v76_v47 }
  0x86   :  { %336 = vmatpush3.xpose.msk.msra.mxu0 %vm135_vm2, %v123_v34 }
  0x87   :  { %337 = vmatprep.subr.mxu0 %v395_v4 }
  0x88   :  { %v74_v50 = vpop.permute.xlu0 %73  ;;  %v72_v53 = vpop.permute.xlu1 %71 }
  0x89   :  { %v117_v52 = vsel %vm111_vm1, %v36_v48, %v74_v50  ;;  %v116_v55 = vsel %vm111_vm1, %v35_v51, %v72_v53 }
  0x8a   :  { %338 = vmatpush3.xpose.msk.msra.mxu0 %vm135_vm2, %v122_v37 }
  0x8b   :  { %339 = vmatprep.subr.mxu0 %v395_v4 }
  0x8c   :  { %v70_v56 = vpop.permute.xlu0 %69  ;;  %v68_v59 = vpop.permute.xlu1 %67 }
  0x8d   :  { %v115_v58 = vsel %vm111_vm1, %v34_v54, %v70_v56  ;;  %v114_v61 = vsel %vm111_vm1, %v33_v57, %v68_v59 }
  0x8e   :  { %340 = vmatpush3.xpose.msk.msra.mxu0 %vm135_vm2, %v121_v40 }
  0x8f   :  { %341 = vmatprep.subr.mxu0 %v395_v4 }
  0x90   :  { %v66_v62 = vpop.permute.xlu0 %65  ;;  %v64_v1 = vpop.permute.xlu1 %63 }
  0x91   :  { %v113_v0 = vsel %vm111_vm1, %v32_v60, %v66_v62  ;;  %v112_v2 = vsel %vm111_vm1, %v31_v63, %v64_v1 }
  0x92   :  { %342 = vmatpush3.xpose.msk.msra.mxu0 %vm135_vm2, %v120_v43 }
  0x93   :  { %343 = vmatprep.subr.mxu0 %v395_v4 }
  0x96   :  { %344 = vmatpush3.xpose.msk.msra.mxu0 %vm135_vm2, %v119_v46 }
  0x97   :  { %345 = vmatprep.subr.mxu0 %v395_v4 }
  0x9a   :  { %346 = vmatpush3.xpose.msk.msra.mxu0 %vm135_vm2, %v118_v49 }
  0x9b   :  { %347 = vmatprep.subr.mxu0 %v395_v4 }
  0x9d   :  { %v133_v5 = vpop.permute.xlu0 %132 }
  0x9e   :  { %348 = vmatpush3.xpose.msk.msra.mxu0 %vm135_vm2, %v117_v52 }
  0x9f   :  { %349 = vmatprep.subr.mxu0 %v395_v4 }
  0xa2   :  { %350 = vmatpush3.xpose.msk.msra.mxu0 %vm135_vm2, %v116_v55 }
  0xa3   :  { %351 = vmatprep.subr.mxu0 %v395_v4 }
  0xa6   :  { %352 = vmatpush3.xpose.msk.msra.mxu0 %vm135_vm2, %v115_v58 }
  0xa7   :  { %353 = vmatprep.subr.mxu0 %v395_v4 }
  0xaa   :  { %354 = vmatpush3.xpose.msk.msra.mxu0 %vm135_vm2, %v114_v61 }
  0xab   :  { %355 = vmatprep.subr.mxu0 %v395_v4 }
  0xae   :  { %356 = vmatpush3.xpose.msk.msra.mxu0 %vm135_vm2, %v113_v0 }
  0xaf   :  { %357 = vmatprep.subr.mxu0 %v395_v4 }
  0xb2   :  { %358 = vmatpush3.xpose.msk.msra.mxu0 %vm135_vm2, %v112_v2 }
  0xb5   :  { %360 = vmatmul.mubr.msk.f32.vlgmr.msra.gmra.mxu0 %vm135_vm2, %v128_v3 }
 0x175   :  { %v253_v6 = vpop.f32.mrf.mxu0 }
 0x176   :  { %v254_v7 = vadd.f32 %v253_v6, %v133_v5 }
 0x177   :  { %v361_v8 = vpop.f32.mrf.mxu0 }
 0x178   :  { %v258_v9 = vsel %vm257_vm3, %v254_v7, -inf }
 0x179   :  { %v259_v10 = vrot.slane %v258_v9, 4 }
 0x17b   :  { %v260_v11 = vmax.f32 %v258_v9, %v259_v10 }
 0x17d   :  { %v261_v12 = vrot.slane %v260_v11, 2 }
 0x17f   :  { %v262_v13 = vmax.f32 %v260_v11, %v261_v12 }
 0x181   :  { %v263_v14 = vrot.slane %v262_v13, 1 }
 0x183   :  { %v264_v4 = vmax.f32 %v262_v13, %v263_v14 }
 0x185   :  { %v265_v15 = vsub.f32 %v254_v7, %v264_v4 }
 0x187   :  { %v266_v16 = vmul.f32 1.442695, %v265_v15 }
 0x189   :  { %368 = vpow2.f32 %v266_v16 }
 0x196   :  { %v369_v17 = vpop.eup %368 }
 0x197   :  { %v268_v18 = vsel %vm257_vm3, %v369_v17, 0.0 }
 0x198   :  { %v269_v19 = vrot.slane %v268_v18, 4 }
 0x19a   :  { %v270_v20 = vadd.f32 %v269_v19, %v268_v18 }
 0x19c   :  { %v271_v21 = vrot.slane %v270_v20, 2 }
 0x19e   :  { %v272_v22 = vadd.f32 %v271_v21, %v270_v20 }
 0x1a0   :  { %v273_v23 = vrot.slane %v272_v22, 1 }
 0x1a2   :  { %v274_v24 = vadd.f32 %v273_v23, %v272_v22 }
 0x1a4   :  { %370 = vlog2.f32 %v274_v24 }
 0x1b1   :  { %v371_v25 = vpop.eup %370 }
 0x1b2   :  { %v276_v26 = vmul.f32 0.6931472, %v371_v25 }
 0x1b4   :  { %v277_v27 = vadd.f32 %v276_v26, %v264_v4 }
 0x1b6   :  { %278 = vst [vmem:[#allocation2] sm:$0x1] %v277_v27 }
 0x1b7   :  { %383 = shalt.err (!%p380_p4)
}
 0x1b8   :  { %288 = dma.vmem_to_hbm [thread:$0]  %s286_s16, 16, %s580_s3, [#allocation3]  }
 0x1b9   :  { %392 = dma.done.wait [#allocation3], 16  }
 0x1ba   :  { %393 = vsyncadd [#allocation3], 4294967280 }
 0x1bb   :  { %292 = vsyncpa [#allocation3], 1 }

</bundles_post_ra>
